<compile_context>
chip_gen: v7x
topology: tpu7x:2x2x1
jax: 0.10.0
libtpu: 0.0.40
codegen_flags: <defaults>
</compile_context>

<pallas_src>
import math
import numpy as np

import jax
import jax.numpy as jnp
from jax.experimental import pallas as pl
from jax.experimental.pallas import tpu as pltpu


# ---------------------------------------------------------------------------
# Host-side constant construction (mirrors the PyTorch module exactly)
# ---------------------------------------------------------------------------
def get_freq_indices(method):
    assert method in ['top1', 'top2', 'top4', 'top8', 'top16', 'top32',
                      'bot1', 'bot2', 'bot4', 'bot8', 'bot16', 'bot32',
                      'low1', 'low2', 'low4', 'low8', 'low16', 'low32']
    num_freq = int(method[3:])
    if 'top' in method:
        all_x = [0, 0, 6, 0, 0, 1, 1, 4, 5, 1, 3, 0, 0, 0, 3, 2,
                 4, 6, 3, 5, 5, 2, 6, 5, 5, 3, 3, 4, 2, 2, 6, 1]
        all_y = [0, 1, 0, 5, 2, 0, 2, 0, 0, 6, 0, 4, 6, 3, 5, 2,
                 6, 3, 3, 3, 5, 1, 1, 2, 4, 2, 1, 1, 3, 0, 5, 3]
    elif 'low' in method:
        all_x = [0, 0, 1, 1, 0, 2, 2, 1, 2, 0, 3, 4, 0, 1, 3, 0,
                 1, 2, 3, 4, 5, 0, 1, 2, 3, 4, 5, 6, 1, 2, 3, 4]
        all_y = [0, 1, 0, 1, 2, 0, 1, 2, 2, 3, 0, 0, 4, 3, 1, 5,
                 4, 3, 2, 1, 0, 6, 5, 4, 3, 2, 1, 0, 6, 5, 4, 3]
    else:  # 'bot'
        all_x = [6, 1, 3, 3, 2, 4, 1, 2, 4, 4, 5, 1, 4, 6, 2, 5,
                 6, 1, 6, 2, 2, 4, 3, 3, 5, 5, 6, 2, 5, 5, 3, 6]
        all_y = [6, 4, 4, 6, 6, 3, 1, 4, 4, 5, 6, 5, 2, 2, 5, 1,
                 4, 3, 5, 0, 3, 1, 1, 2, 4, 2, 1, 1, 5, 3, 3, 3]
    return all_x[:num_freq], all_y[:num_freq]


def _build_filter(pos, freq, POS):
    result = math.cos(math.pi * freq * (pos + 0.5) / POS) / math.sqrt(POS)
    return result if freq == 0 else result * math.sqrt(2)


def get_dct_filter(tile_size_x, tile_size_y, mapper_x, mapper_y, channel):
    dct_filter = np.zeros((channel, tile_size_x, tile_size_y), dtype=np.float32)
    c_part = channel // len(mapper_x)
    for i, (u_x, v_y) in enumerate(zip(mapper_x, mapper_y)):
        for t_x in range(tile_size_x):
            for t_y in range(tile_size_y):
                dct_filter[i * c_part:(i + 1) * c_part, t_x, t_y] = (
                    _build_filter(t_x, u_x, tile_size_x)
                    * _build_filter(t_y, v_y, tile_size_y))
    return dct_filter


def _adaptive_pool_matrix(in_size, out_size):
    """P (out_size, in_size) s.t. P @ v == adaptive_avg_pool1d(v) (PyTorch bin rule)."""
    P = np.zeros((out_size, in_size), dtype=np.float32)
    for i in range(out_size):
        s = (i * in_size) // out_size
        e = -(((-(i + 1)) * in_size) // out_size)   # ceil((i+1)*in/out)
        P[i, s:e] = 1.0 / (e - s)
    return P


# ---------------------------------------------------------------------------
# Fused Pallas kernel: gate computation + channel re-scaling in a single pass.
# ---------------------------------------------------------------------------
def _msa_fused_kernel(x_ref, dct_ref, w1t_ref, w2t_ref, out_ref):
    x = x_ref[...].astype(jnp.float32)                                 # (TB, C, HW)
    # Per-channel DCT-weighted spatial sum (VPU multiply + lane-axis XLU reduce).
    y = jnp.sum(x * dct_ref[...][None, :, :], axis=-1)                 # (TB, C)
    # Squeeze-excite MLP (tiny matmuls).
    h = jnp.maximum(jnp.dot(y, w1t_ref[...],
                            preferred_element_type=jnp.float32), 0.0)  # (TB, hid)
    t = jnp.dot(h, w2t_ref[...], preferred_element_type=jnp.float32)   # (TB, C)
    z = 1.0 / (1.0 + jnp.exp(-t))                                      # sigmoid (EUP)
    out_ref[...] = (x * z[:, :, None]).astype(out_ref.dtype)


# ---------------------------------------------------------------------------
# Wrapper
# ---------------------------------------------------------------------------
def multi_spectral_attention_layer(x, dct_weight, w1, w2, *, dct_h, dct_w,
                                   target_tile_bytes=4 * 1024 * 1024,
                                   vmem_budget_bytes=48 * 1024 * 1024):
    """x: (N, C, H, W).  dct_weight: (C, dct_h, dct_w).  w1: (C//r, C).  w2: (C, C//r)."""
    N, C, H, W = x.shape
    hid = w1.shape[0]
    assert dct_weight.shape == (C, dct_h, dct_w)
    assert w1.shape == (hid, C) and w2.shape == (C, hid)

    # Fold adaptive average pooling (a linear per-channel op) into the DCT filter so the
    # kernel always works directly on x at full resolution -> single HBM pass over x.
    dct_f = jnp.asarray(dct_weight, jnp.float32)
    if (H, W) != (dct_h, dct_w):
        Ph = jnp.asarray(_adaptive_pool_matrix(H, dct_h))               # (dct_h, H)
        Pw = jnp.asarray(_adaptive_pool_matrix(W, dct_w))               # (dct_w, W)
        dct_f = jnp.einsum('ah,cab,bw->chw', Ph, dct_f, Pw)             # (C, H, W)
    dct_flat = dct_f.reshape(C, H * W)

    w1t = jnp.asarray(w1, jnp.float32).T                                # (C, hid)
    w2t = jnp.asarray(w2, jnp.float32).T                                # (hid, C)
    x_flat = x.reshape(N, C, H * W)                                     # free, contiguous

    # ---- batch tiling: biggest divisor-of-N tile under the byte target / VMEM budget ----
    itemsize = jnp.dtype(x.dtype).itemsize
    per_item_in = C * H * W * itemsize          # one sample of x
    per_item_f32 = C * H * W * 4                # f32 working copy inside the kernel
    const_bytes = (dct_flat.size + w1t.size + w2t.size) * 4

    def _footprint(tb):
        # 2x for Pallas double-buffering of in/out tiles; constants + f32 intermediates + slack.
        return (2 * tb * per_item_in            # input tile (double-buffered)
                + 2 * tb * per_item_in          # output tile (double-buffered)
                + 2 * const_bytes               # dct_eff + FC weights
                + 2 * tb * per_item_f32         # in-kernel f32 temporaries
                + (2 << 20))

    tb = max(1, min(N, target_tile_bytes // max(per_item_in, 1)))
    while N % tb:
        tb -= 1
    while tb > 1 and _footprint(tb) > vmem_budget_bytes:
        tb -= 1
        while N % tb:
            tb -= 1
    grid = (N // tb,)

    vmem_limit = int(min(64 * 1024 * 1024, max(16 * 1024 * 1024, _footprint(tb))))
    cparams = pltpu.CompilerParams(dimension_semantics=("parallel",),
                                   vmem_limit_bytes=vmem_limit)

    out_flat = pl.pallas_call(
        _msa_fused_kernel,
        out_shape=jax.ShapeDtypeStruct((N, C, H * W), x.dtype),
        grid_spec=pltpu.PrefetchScalarGridSpec(
            num_scalar_prefetch=0,
            grid=grid,
            in_specs=[
                pl.BlockSpec((tb, C, H * W), lambda i: (i, 0, 0)),
                pl.BlockSpec((C, H * W), lambda i: (0, 0)),   # constant -> DMA'd once
                pl.BlockSpec((C, hid), lambda i: (0, 0)),
                pl.BlockSpec((hid, C), lambda i: (0, 0)),
            ],
            out_specs=pl.BlockSpec((tb, C, H * W), lambda i: (i, 0, 0)),
        ),
        compiler_params=cparams,
    )(x_flat, dct_flat, w1t, w2t)
    return out_flat.reshape(N, C, H, W)


# ---------------------------------------------------------------------------
# Pure-JAX reference (mirrors the PyTorch forward: pool first, then DCT sum)
# ---------------------------------------------------------------------------
def _reference_msa(x, dct_weight, w1, w2, dct_h, dct_w):
    N, C, H, W = x.shape
    xf = x.astype(jnp.float32)
    if (H, W) != (dct_h, dct_w):
        Ph = jnp.asarray(_adaptive_pool_matrix(H, dct_h))
        Pw = jnp.asarray(_adaptive_pool_matrix(W, dct_w))
        xp = jnp.einsum('ah,nchw,bw->ncab', Ph, xf, Pw)                 # adaptive_avg_pool2d
    else:
        xp = xf
    y = jnp.sum(xp * dct_weight[None].astype(jnp.float32), axis=(2, 3))
    h = jnp.maximum(y @ jnp.asarray(w1, jnp.float32).T, 0.0)
    z = jax.nn.sigmoid(h @ jnp.asarray(w2, jnp.float32).T)
    return (xf * z[:, :, None, None]).astype(x.dtype)


if __name__ == "__main__":
    # Small but representative shapes: channel must be divisible by num_freq (top16).
    N, C = 2, 64
    dct_h = dct_w = 16
    reduction = 16
    hid = C // reduction

    # Module constants (identical to the PyTorch module's __init__).
    mapper_x, mapper_y = get_freq_indices('top16')
    mapper_x = [mx * (dct_h // 7) for mx in mapper_x]
    mapper_y = [my * (dct_w // 7) for my in mapper_y]
    dct_weight = jnp.asarray(get_dct_filter(dct_h, dct_w, mapper_x, mapper_y, C))

    key = jax.random.PRNGKey(0)
    kx1, kx2, k1, k2 = jax.random.split(key, 4)
    w1 = jax.random.normal(k1, (hid, C), dtype=jnp.float32) / jnp.sqrt(C)    # Linear(C, C//r)
    w2 = jax.random.normal(k2, (C, hid), dtype=jnp.float32) / jnp.sqrt(hid)  # Linear(C//r, C)

    # Case 1: input spatial size matches the DCT size (no pooling in the PyTorch forward).
    x1 = jax.random.normal(kx1, (N, C, dct_h, dct_w), dtype=jnp.float32)
    out1 = jax.block_until_ready(
        multi_spectral_attention_layer(x1, dct_weight, w1, w2, dct_h=dct_h, dct_w=dct_w))
    ref1 = _reference_msa(x1, dct_weight, w1, w2, dct_h, dct_w)
    assert out1.shape == x1.shape and out1.dtype == x1.dtype
    assert jnp.allclose(out1, ref1, atol=1e-4, rtol=1e-4), "mismatch (matched-size path)"

    # Case 2: larger input -> adaptive_avg_pool2d path (folded into the DCT weights).
    x2 = jax.random.normal(kx2, (N, C, 32, 32), dtype=jnp.float32)
    out2 = jax.block_until_ready(
        multi_spectral_attention_layer(x2, dct_weight, w1, w2, dct_h=dct_h, dct_w=dct_w))
    ref2 = _reference_msa(x2, dct_weight, w1, w2, dct_h, dct_w)
    assert out2.shape == x2.shape and out2.dtype == x2.dtype
    assert jnp.allclose(out2, ref2, atol=1e-4, rtol=1e-4), "mismatch (pooled path)"

    print("KERNEL_OK")
</pallas_src>

<mosaic_0001>
module attributes {stable_mosaic.version = 11 : i64} {
  func.func @_msa_fused_kernel(%arg0: i32, %arg1: memref<2x64x256xf32, #tpu.memory_space<vmem>>, %arg2: memref<64x256xf32, #tpu.memory_space<vmem>>, %arg3: memref<64x4xf32, #tpu.memory_space<vmem>>, %arg4: memref<4x64xf32, #tpu.memory_space<vmem>>, %arg5: memref<2x64x256xf32, #tpu.memory_space<vmem>>) attributes {dimension_semantics = [#tpu.dimension_semantics<parallel>], iteration_bounds = array<i64: 1>, scalar_prefetch = 0 : i64, scratch_operands = 0 : i64, tpu.core_type = #tpu.core_type<tc>, window_params = [{transform_indices = @transform_0, window_bounds = array<i64: 2, 64, 256>}, {pipeline_mode = #tpu.pipeline_mode<synchronous>, transform_indices = @transform_1, window_bounds = array<i64: 64, 256>}, {pipeline_mode = #tpu.pipeline_mode<synchronous>, transform_indices = @transform_2, window_bounds = array<i64: 64, 4>}, {pipeline_mode = #tpu.pipeline_mode<synchronous>, transform_indices = @transform_3, window_bounds = array<i64: 4, 64>}, {transform_indices = @transform_4, window_bounds = array<i64: 2, 64, 256>}]} {
    %c0 = arith.constant 0 : index
    %c0_0 = arith.constant 0 : index
    %c0_1 = arith.constant 0 : index
    %0 = vector.load %arg1[%c0, %c0_0, %c0_1] : memref<2x64x256xf32, #tpu.memory_space<vmem>>, vector<2x64x256xf32>
    %c0_2 = arith.constant 0 : index
    %c0_3 = arith.constant 0 : index
    %1 = vector.load %arg2[%c0_2, %c0_3] : memref<64x256xf32, #tpu.memory_space<vmem>>, vector<64x256xf32>
    %2 = vector.shape_cast %1 : vector<64x256xf32> to vector<1x64x256xf32>
    %3 = vector.broadcast %2 : vector<1x64x256xf32> to vector<2x64x256xf32>
    %4 = arith.mulf %0, %3 : vector<2x64x256xf32>
    %cst = arith.constant dense<0.000000e+00> : vector<2x64xf32>
    %5 = vector.multi_reduction <add>, %4, %cst [2] : vector<2x64x256xf32> to vector<2x64xf32>
    %c0_4 = arith.constant 0 : index
    %c0_5 = arith.constant 0 : index
    %6 = vector.load %arg3[%c0_4, %c0_5] : memref<64x4xf32, #tpu.memory_space<vmem>>, vector<64x4xf32>
    %cst_6 = arith.constant dense<0.000000e+00> : vector<2x4xf32>
    %7 = tpu.matmul %5, %6, %cst_6 {dimension_numbers = #tpu.dot_dimension_numbers<[1], [0], [0], [1], [0, 0, 1, 1], [], []>} : vector<2x64xf32>, vector<64x4xf32>, vector<2x4xf32> -> vector<2x4xf32>
    %cst_7 = arith.constant 0.000000e+00 : f32
    %8 = vector.broadcast %cst_7 : f32 to vector<2x4xf32>
    %9 = arith.maximumf %7, %8 : vector<2x4xf32>
    %c0_8 = arith.constant 0 : index
    %c0_9 = arith.constant 0 : index
    %10 = vector.load %arg4[%c0_8, %c0_9] : memref<4x64xf32, #tpu.memory_space<vmem>>, vector<4x64xf32>
    %cst_10 = arith.constant dense<0.000000e+00> : vector<2x64xf32>
    %11 = tpu.matmul %9, %10, %cst_10 {dimension_numbers = #tpu.dot_dimension_numbers<[1], [0], [0], [1], [0, 0, 1, 1], [], []>} : vector<2x4xf32>, vector<4x64xf32>, vector<2x64xf32> -> vector<2x64xf32>
    %cst_11 = arith.constant 0.000000e+00 : f32
    %12 = vector.broadcast %cst_11 : f32 to vector<2x64xf32>
    %13 = arith.subf %12, %11 : vector<2x64xf32>
    %14 = math.exp %13 : vector<2x64xf32>
    %cst_12 = arith.constant 1.000000e+00 : f32
    %15 = vector.broadcast %cst_12 : f32 to vector<2x64xf32>
    %16 = arith.addf %15, %14 : vector<2x64xf32>
    %cst_13 = arith.constant 1.000000e+00 : f32
    %17 = vector.broadcast %cst_13 : f32 to vector<2x64xf32>
    %18 = arith.divf %17, %16 : vector<2x64xf32>
    %19 = vector.shape_cast %18 : vector<2x64xf32> to vector<2x64x1xf32>
    %20 = vector.broadcast %19 : vector<2x64x1xf32> to vector<2x64x256xf32>
    %21 = arith.mulf %0, %20 : vector<2x64x256xf32>
    %c0_14 = arith.constant 0 : index
    %c0_15 = arith.constant 0 : index
    %c0_16 = arith.constant 0 : index
    %22 = vector.load %arg5[%c0_14, %c0_15, %c0_16] : memref<2x64x256xf32, #tpu.memory_space<vmem>>, vector<2x64x256xf32>
    tpu.vector_store %arg5[%c0_14, %c0_15, %c0_16], %21 {strides = array<i32>} : memref<2x64x256xf32, #tpu.memory_space<vmem>>, vector<2x64x256xf32>,
    return
  }
  func.func @transform_0(%arg0: i32) -> (i32, i32, i32) {
    %c0_i32 = arith.constant 0 : i32
    %c0_i32_0 = arith.constant 0 : i32
    %c0_i32_1 = arith.constant 0 : i32
    return %arg0, %c0_i32, %c0_i32_0 : i32, i32, i32
  }
  func.func @transform_1(%arg0: i32) -> (i32, i32) {
    %c0_i32 = arith.constant 0 : i32
    %c0_i32_0 = arith.constant 0 : i32
    %c0_i32_1 = arith.constant 0 : i32
    return %c0_i32, %c0_i32_0 : i32, i32
  }
  func.func @transform_2(%arg0: i32) -> (i32, i32) {
    %c0_i32 = arith.constant 0 : i32
    %c0_i32_0 = arith.constant 0 : i32
    %c0_i32_1 = arith.constant 0 : i32
    return %c0_i32, %c0_i32_0 : i32, i32
  }
  func.func @transform_3(%arg0: i32) -> (i32, i32) {
    %c0_i32 = arith.constant 0 : i32
    %c0_i32_0 = arith.constant 0 : i32
    %c0_i32_1 = arith.constant 0 : i32
    return %c0_i32, %c0_i32_0 : i32, i32
  }
  func.func @transform_4(%arg0: i32) -> (i32, i32, i32) {
    %c0_i32 = arith.constant 0 : i32
    %c0_i32_0 = arith.constant 0 : i32
    %c0_i32_1 = arith.constant 0 : i32
    return %arg0, %c0_i32, %c0_i32_0 : i32, i32, i32
  }
}

</mosaic_0001>

<bundles_post_ra>
// kernel: tpu_custom_call.1
= control target key start
LH: loop header
LB: loop body
LE: loop exit
PB: predicated region body
PF: predicated region fallthrough
CT: control target
= control target key end

     0   :  { %9 = vsyncpa [#allocation3], 0  ;;  %s994_s0 = inlined_call_operand.hbm [shape: f32[2,64,256], index: 0, kind: input, shape index: {}]   ;;  %s995_s1 = inlined_call_operand.hbm [shape: f32[64,256], index: 1, kind: input, shape index: {}]   ;;  %s996_s2 = inlined_call_operand.vmem [shape: f32[64,4], index: 2, kind: input, shape index: {}]   ;;  %s997_s3 = inlined_call_operand.vmem [shape: f32[4,64], index: 3, kind: input, shape index: {}]   ;;  %s998_s4 = inlined_call_operand.hbm [shape: f32[2,64,256], index: 4, kind: output, shape index: {}]  }
   0x1   :  { %10 = vsyncpa [#allocation6], 0 }
   0x2   :  { %11 = vsyncpa [#allocation4], 0  ;;  %s739_s15 = smov [#allocation2]   ;;  %s667_s19 = scalar_lea.hbm %s994_s0, 4096 }
   0x3   :  { %s17_s16 = sshll.u32 %s739_s15, 4  ;;  %p668_p0 = scmp.ne.s32.totalorder %s994_s0, %s667_s19  ;;  %s18_s16 = int_to_ptr.vmem [resolvable:$true] %s17_s16 }
   0x4   :  { %p671_p1 = scmp.lt.u32.totalorder %s667_s19, %s994_s0 }
   0x6   :  { %p673_p2 = pnand %p671_p1, %p668_p0 }
   0x8   :  { %676 = shalt.err (!%p673_p2)
}
   0x9   :  { %s677_s24 = scalar_lea.vmem %s18_s16, 4096  ;;  %p682_p4 = scmp.lt.s32.totalorder %s18_s16, %s18_s16 }
   0xa   :  { %p678_p3 = scmp.ne.s32.totalorder %s18_s16, %s677_s24  ;;  %p683_p5 = scmp.lt.s32.totalorder %s677_s24, %s677_s24 }
   0xc   :  { %p684_p6 = por %p683_p5, %p682_p4 }
   0xe   :  { %p685_p7 = pnand %p684_p6, %p678_p3 }
  0x10   :  { %688 = shalt.err (!%p685_p7)
}
  0x11   :  { %s740_s25 = smov 256   ;;  %s741_s26 = smov 16  }
  0x12   :  { %23 = dma.hbm_to_vmem [thread:$0]  %s994_s0, 4096, %s18_s16, [#allocation3], %s740_s25, %s740_s25, %s741_s26  }
  0x13   :  { %s742_s29 = smov [#allocation5]   ;;  %s689_s7 = scalar_lea.hbm %s995_s1, 2048 }
  0x14   :  { %s29_s30 = sshll.u32 %s742_s29, 4  ;;  %p690_p8 = scmp.ne.s32.totalorder %s995_s1, %s689_s7  ;;  %s30_s30 = int_to_ptr.vmem [resolvable:$true] %s29_s30 }
  0x15   :  { %p693_p9 = scmp.lt.u32.totalorder %s689_s7, %s995_s1 }
  0x17   :  { %p695_p10 = pnand %p693_p9, %p690_p8 }
  0x19   :  { %698 = shalt.err (!%p695_p10)
}
  0x1a   :  { %s699_s12 = scalar_lea.vmem %s30_s30, 2048  ;;  %p704_p12 = scmp.lt.s32.totalorder %s30_s30, %s30_s30 }
  0x1b   :  { %p700_p11 = scmp.ne.s32.totalorder %s30_s30, %s699_s12  ;;  %p705_p13 = scmp.lt.s32.totalorder %s699_s12, %s699_s12 }
  0x1d   :  { %p706_p0 = por %p705_p13, %p704_p12 }
  0x1f   :  { %p707_p1 = pnand %p706_p0, %p700_p11 }
  0x21   :  { %710 = shalt.err (!%p707_p1)
}
  0x22   :  { %35 = dma.hbm_to_vmem [thread:$0]  %s995_s1, 2048, %s30_s30, [#allocation6], %s740_s25, %s740_s25, %s741_s26  }
  0x23   :  { %733 = dma.done.wait [#allocation3], 4096  }
  0x24   :  { %734 = vsyncadd [#allocation3], 4294963200 }
  0x25   :  { %735 = dma.done.wait [#allocation6], 2048  }
  0x26   :  { %736 = vsyncadd [#allocation6], 4294965248  ;;  %v802_v0 = vld [vmem:[#allocation2 + $0x80] sm:$0xff]  ;;  %v804_v1 = vld [vmem:[#allocation2 + $0x88] sm:$0xff]  ;;  %vm744_vm0 = vmmov 0   ;;  %vm209_vm1 = vcmask 130112  }
  0x27   :  { %v78_v2 = vld [vmem:[#allocation5] sm:$0xff]  ;;  %v79_v3 = vld [vmem:[#allocation5 + $0x8] sm:$0xff]  ;;  %v814_v10 = vld [vmem:[#allocation2 + $0x90] sm:$0xff]  ;;  %vm216_vm2 = vcmask 195712   ;;  %vm223_vm3 = vcmask 261312   ;;  %vm230_vm4 = vcmask 326912  }
  0x28   :  { %v110_v4 = vmul.f32 %v78_v2, %v802_v0  ;;  %v807_v5 = vld [vmem:[#allocation2] sm:$0xff]  ;;  %v809_v6 = vld [vmem:[#allocation2 + $0x8] sm:$0xff]  ;;  %v111_v7 = vmul.f32 %v79_v3, %v804_v1  ;;  %v816_v11 = vld [vmem:[#allocation2 + $0x98] sm:$0xff]  ;;  %vm237_vm5 = vcmask 392512   ;;  %vm244_vm6 = vcmask 458112  }
  0x29   :  { %v94_v8 = vmul.f32 %v78_v2, %v807_v5  ;;  %v95_v9 = vmul.f32 %v79_v3, %v809_v6  ;;  %v80_v12 = vld [vmem:[#allocation5 + $0x10] sm:$0xff]  ;;  %v81_v13 = vld [vmem:[#allocation5 + $0x18] sm:$0xff]  ;;  %v825_v21 = vld [vmem:[#allocation2 + $0xa0] sm:$0xff]  ;;  %vm251_vm7 = vcmask 523712   ;;  %vm292_vm8 = vcmask 1041409  }
  0x2a   :  { %v112_v14 = vmul.f32 %v80_v12, %v814_v10  ;;  %v819_v15 = vld [vmem:[#allocation2 + $0x10] sm:$0xff]  ;;  %v821_v16 = vld [vmem:[#allocation2 + $0x18] sm:$0xff]  ;;  %v150_v17 = vadd.f32 %v111_v7, %v110_v4  ;;  %v113_v19 = vmul.f32 %v81_v13, %v816_v11  ;;  %v827_v22 = vld [vmem:[#allocation2 + $0xa8] sm:$0xff]  ;;  %vm294_vm9 = vcmask 523264  }
  0x2b   :  { %v126_v18 = vadd.f32 %v95_v9, %v94_v8  ;;  %v96_v20 = vmul.f32 %v80_v12, %v819_v15  ;;  %v82_v23 = vld [vmem:[#allocation5 + $0x20] sm:$0xff]  ;;  %v97_v24 = vmul.f32 %v81_v13, %v821_v16  ;;  %v83_v25 = vld [vmem:[#allocation5 + $0x28] sm:$0xff]  ;;  %v837_v32 = vld [vmem:[#allocation2 + $0xb0] sm:$0xff]  ;;  %vm373_vm10 = vcmask 1043456  }
  0x2c   :  { %v114_v26 = vmul.f32 %v82_v23, %v825_v21  ;;  %v831_v27 = vld [vmem:[#allocation2 + $0x20] sm:$0xff]  ;;  %v833_v28 = vld [vmem:[#allocation2 + $0x28] sm:$0xff]  ;;  %151 = vadd.xlane.f32.xlu1 %v150_v17  ;;  %v153_v29 = vadd.f32 %v113_v19, %v112_v14  ;;  %v115_v30 = vmul.f32 %v83_v25, %v827_v22  ;;  %v839_v33 = vld [vmem:[#allocation2 + $0xb8] sm:$0xff]  ;;  %vm369_vm11 = vcmask 31744  }
  0x2d   :  { %127 = vadd.xlane.f32.xlu0 %v126_v18  ;;  %v98_v31 = vmul.f32 %v82_v23, %v831_v27  ;;  %v84_v34 = vld [vmem:[#allocation5 + $0x30] sm:$0xff]  ;;  %v129_v35 = vadd.f32 %v97_v24, %v96_v20  ;;  %v99_v36 = vmul.f32 %v83_v25, %v833_v28  ;;  %v85_v37 = vld [vmem:[#allocation5 + $0x38] sm:$0xff]  ;;  %v848_v43 = vld [vmem:[#allocation2 + $0xc0] sm:$0xff] }
  0x2e   :  { %v842_v38 = vld [vmem:[#allocation2 + $0x30] sm:$0xff]  ;;  %v844_v39 = vld [vmem:[#allocation2 + $0x38] sm:$0xff]  ;;  %v156_v40 = vadd.f32 %v115_v30, %v114_v26  ;;  %v116_v41 = vmul.f32 %v84_v34, %v837_v32  ;;  %v117_v42 = vmul.f32 %v85_v37, %v839_v33  ;;  %v852_v47 = vld [vmem:[#allocation2 + $0xc8] sm:$0xff] }
  0x2f   :  { %v132_v44 = vadd.f32 %v99_v36, %v98_v31  ;;  %v100_v45 = vmul.f32 %v84_v34, %v842_v38  ;;  %v101_v46 = vmul.f32 %v85_v37, %v844_v39  ;;  %v86_v48 = vld [vmem:[#allocation5 + $0x40] sm:$0xff]  ;;  %v87_v49 = vld [vmem:[#allocation5 + $0x48] sm:$0xff]  ;;  %v860_v55 = vld [vmem:[#allocation2 + $0xd0] sm:$0xff] }
  0x30   :  { %154 = vadd.xlane.f32.xlu1 %v153_v29  ;;  %v854_v50 = vld [vmem:[#allocation2 + $0x40] sm:$0xff]  ;;  %v856_v51 = vld [vmem:[#allocation2 + $0x48] sm:$0xff]  ;;  %v159_v52 = vadd.f32 %v117_v42, %v116_v41  ;;  %v118_v53 = vmul.f32 %v86_v48, %v848_v43  ;;  %v119_v54 = vmul.f32 %v87_v49, %v852_v47  ;;  %1003 = vst [vmem:[#allocation11_spill] sm:$0xff] %v860_v55  ;;  %v864_v59 = vld [vmem:[#allocation2 + $0xd8] sm:$0xff] }
  0x31   :  { %130 = vadd.xlane.f32.xlu0 %v129_v35  ;;  %v135_v56 = vadd.f32 %v101_v46, %v100_v45  ;;  %v102_v57 = vmul.f32 %v86_v48, %v854_v50  ;;  %v103_v58 = vmul.f32 %v87_v49, %v856_v51  ;;  %1004 = vst [vmem:[#allocation12_spill] sm:$0xff] %v864_v59  ;;  %v88_v60 = vld [vmem:[#allocation5 + $0x50] sm:$0xff]  ;;  %v89_v61 = vld [vmem:[#allocation5 + $0x58] sm:$0xff]  ;;  %v872_v7 = vld [vmem:[#allocation2 + $0xe0] sm:$0xff] }
  0x32   :  { %v866_v62 = vld [vmem:[#allocation2 + $0x50] sm:$0xff]  ;;  %v868_v63 = vld [vmem:[#allocation2 + $0x58] sm:$0xff]  ;;  %v162_v2 = vadd.f32 %v119_v54, %v118_v53  ;;  %v120_v3 = vmul.f32 %v88_v60, %v860_v55  ;;  %v121_v4 = vmul.f32 %v89_v61, %v864_v59  ;;  %v876_v13 = vld [vmem:[#allocation2 + $0xe8] sm:$0xff] }
  0x33   :  { %v138_v8 = vadd.f32 %v103_v58, %v102_v57  ;;  %v104_v9 = vmul.f32 %v88_v60, %v866_v62  ;;  %v105_v12 = vmul.f32 %v89_v61, %v868_v63  ;;  %v90_v14 = vld [vmem:[#allocation5 + $0x60] sm:$0xff]  ;;  %v91_v17 = vld [vmem:[#allocation5 + $0x68] sm:$0xff]  ;;  %v884_v25 = vld [vmem:[#allocation2 + $0xf0] sm:$0xff] }
  0x34   :  { %157 = vadd.xlane.f32.xlu1 %v156_v40  ;;  %v878_v18 = vld [vmem:[#allocation2 + $0x60] sm:$0xff]  ;;  %v880_v19 = vld [vmem:[#allocation2 + $0x68] sm:$0xff]  ;;  %v165_v20 = vadd.f32 %v121_v4, %v120_v3  ;;  %v122_v23 = vmul.f32 %v90_v14, %v872_v7  ;;  %v123_v24 = vmul.f32 %v91_v17, %v876_v13  ;;  %1005 = vst [vmem:[#allocation13_spill] sm:$0xff] %v884_v25  ;;  %v888_v31 = vld [vmem:[#allocation2 + $0xf8] sm:$0xff] }
  0x35   :  { %133 = vadd.xlane.f32.xlu0 %v132_v44  ;;  %v141_v26 = vadd.f32 %v105_v12, %v104_v9  ;;  %v106_v29 = vmul.f32 %v90_v14, %v878_v18  ;;  %v107_v30 = vmul.f32 %v91_v17, %v880_v19  ;;  %1006 = vst [vmem:[#allocation14_spill] sm:$0xff] %v888_v31  ;;  %v92_v34 = vld [vmem:[#allocation5 + $0x70] sm:$0xff]  ;;  %v93_v35 = vld [vmem:[#allocation5 + $0x78] sm:$0xff]  ;;  %v175_v53 = vld [vmem:[%s996_s2 + $0x8] sm:$0xff]  ;;  %v745_v12 = vmov 0.0  }
  0x36   :  { %v890_v36 = vld [vmem:[#allocation2 + $0x70] sm:$0xff]  ;;  %v892_v37 = vld [vmem:[#allocation2 + $0x78] sm:$0xff]  ;;  %v168_v40 = vadd.f32 %v123_v24, %v122_v23  ;;  %v124_v41 = vmul.f32 %v92_v34, %v884_v25  ;;  %v125_v42 = vmul.f32 %v93_v35, %v888_v31  ;;  %v178_v61 = vld [vmem:[%s996_s2 + $0x20] sm:$0xff]  ;;  %635 = vmatprep.mubr.msk.f32.mxu0 %vm744_vm0, %v745_v12  ;;  %638 = vmatprep.subr.mxu1 %v745_v12  ;;  %v198_v24 = vlaneseq }
  0x37   :  { %v144_v44 = vadd.f32 %v107_v30, %v106_v29  ;;  %v108_v45 = vmul.f32 %v92_v34, %v890_v36  ;;  %v109_v46 = vmul.f32 %v93_v35, %v892_v37  ;;  %v176_v57 = vld [vmem:[%s996_s2 + $0x10] sm:$0xff]  ;;  %v177_v58 = vld [vmem:[%s996_s2 + $0x18] sm:$0xff]  ;;  %640 = vmatprep.mubr.msk.f32.mxu1 %vm744_vm0, %v745_v12 }
  0x38   :  { %160 = vadd.xlane.f32.xlu1 %v159_v52  ;;  %v171_v48 = vadd.f32 %v125_v42, %v124_v41  ;;  %v174_v52 = vld [vmem:[%s996_s2] sm:$0xff]  ;;  %v647_v60 = vpack.c.bf16 %v177_v58, %v176_v57  ;;  %v180_v4 = vld [vmem:[%s996_s2 + $0x30] sm:$0xff]  ;;  %v199_v30 = vand.u32 127, %v198_v24  ;;  %v922_v42 = vshrl.u32 %v198_v24, 7 }
  0x39   :  { %136 = vadd.xlane.f32.xlu0 %v135_v56  ;;  %v147_v49 = vadd.f32 %v109_v46, %v108_v45  ;;  %v644_v54 = vpack.c.bf16 %v175_v53, %v174_v52  ;;  %v743_v56 = vmov 0.0|0.0  }
  0x3a   :  { %643 = vmatprep.subr.bf16.mxu0 %v743_v56  ;;  %v211_v41 = vadd.s32 4294967280, %v199_v30  ;;  %v225_v45 = vadd.s32 4294967264, %v199_v30  ;;  %v232_v52 = vadd.s32 4294967256, %v199_v30 }
  0x3b   :  { %645 = vmatpush3.bf16.msra.mxu0 %v644_v54  ;;  %v239_v54 = vadd.s32 4294967248, %v199_v30 }
  0x3c   :  { %163 = vadd.xlane.f32.xlu1 %v162_v2  ;;  %646 = vmatprep.subr.bf16.mxu0 %v743_v56  ;;  %v179_v2 = vld [vmem:[%s996_s2 + $0x28] sm:$0xff]  ;;  %v214_v53 = vsub.s32 %v211_v41, %v922_v42  ;;  %v228_v58 = vsub.s32 %v225_v45, %v922_v42 }
  0x3d   :  { %139 = vadd.xlane.f32.xlu0 %v138_v8  ;;  %v650_v3 = vpack.c.bf16 %v179_v2, %v178_v61  ;;  %v181_v8 = vld [vmem:[%s996_s2 + $0x38] sm:$0xff]  ;;  %v246_v2 = vadd.s32 4294967240, %v199_v30  ;;  %v242_v24 = vsub.s32 %v239_v54, %v922_v42 }
  0x3e   :  { %v653_v9 = vpack.c.bf16 %v181_v8, %v180_v4  ;;  %v235_v8 = vsub.s32 %v232_v52, %v922_v42 }
  0x3f   :  { %648 = vmatpush3.bf16.msra.mxu0 %v647_v60 }
  0x40   :  { %166 = vadd.xlane.f32.xlu1 %v165_v20  ;;  %649 = vmatprep.subr.bf16.mxu0 %v743_v56 }
  0x41   :  { %142 = vadd.xlane.f32.xlu0 %v141_v26 }
  0x43   :  { %651 = vmatpush3.bf16.msra.mxu0 %v650_v3 }
  0x44   :  { %169 = vadd.xlane.f32.xlu1 %v168_v40  ;;  %652 = vmatprep.subr.bf16.mxu0 %v743_v56  ;;  %v204_v40 = vadd.s32 4294967288, %v199_v30  ;;  %v202_v56 = vsub.s32 %v199_v30, %v922_v42 }
  0x45   :  { %145 = vadd.xlane.f32.xlu0 %v144_v44  ;;  %v218_v44 = vadd.s32 4294967272, %v199_v30 }
  0x47   :  { %654 = vmatpush3.bf16.msra.mxu0 %v653_v9  ;;  %v221_v57 = vsub.s32 %v218_v44, %v922_v42 }
  0x48   :  { %172 = vadd.xlane.f32.xlu1 %v171_v48 }
  0x49   :  { %148 = vadd.xlane.f32.xlu0 %v147_v49  ;;  %v207_v49 = vsub.s32 %v204_v40, %v922_v42 }
  0xb9   :  { %v152_v14 = vpop.xlane.xlu1 %151 }
  0xba   :  { %v128_v17 = vpop.xlane.xlu0 %127  ;;  %v256_v40 = vrot.slane %v152_v14, %v202_v56 }
  0xbb   :  { %v203_v41 = vrot.slane %v128_v17, %v202_v56 }
  0xbd   :  { %v155_v20 = vpop.xlane.xlu1 %154 }
  0xbe   :  { %v131_v23 = vpop.xlane.xlu0 %130  ;;  %v260_v3 = vrot.slane %v155_v20, %v207_v49  ;;  %v249_v20 = vsub.s32 %v246_v2, %v922_v42 }
  0xbf   :  { %v208_v4 = vrot.slane %v131_v23, %v207_v49 }
  0xc0   :  { %v261_v23 = vsel %vm209_vm1, %v260_v3, %v256_v40 }
  0xc1   :  { %v158_v26 = vpop.xlane.xlu1 %157  ;;  %v210_v30 = vsel %vm209_vm1, %v208_v4, %v203_v41 }
  0xc2   :  { %v134_v29 = vpop.xlane.xlu0 %133  ;;  %v265_v9 = vrot.slane %v158_v26, %v214_v53 }
  0xc3   :  { %v215_v12 = vrot.slane %v134_v29, %v214_v53 }
  0xc4   :  { %v266_v49 = vsel %vm216_vm2, %v265_v9, %v261_v23 }
  0xc5   :  { %v161_v34 = vpop.xlane.xlu1 %160  ;;  %v217_v14 = vsel %vm216_vm2, %v215_v12, %v210_v30  ;;  %v490_v30 = vsub.s32 1, %v922_v42 }
  0xc6   :  { %v137_v35 = vpop.xlane.xlu0 %136  ;;  %v270_v44 = vrot.slane %v161_v34, %v221_v57 }
  0xc7   :  { %v222_v31 = vrot.slane %v137_v35, %v221_v57 }
  0xc8   :  { %v271_v35 = vsel %vm223_vm3, %v270_v44, %v266_v49 }
  0xc9   :  { %v164_v46 = vpop.xlane.xlu1 %163 }
  0xca   :  { %v140_v48 = vpop.xlane.xlu0 %139  ;;  %v275_v25 = vrot.slane %v164_v46, %v228_v58  ;;  %v224_v46 = vsel %vm223_vm3, %v222_v31, %v217_v14 }
  0xcb   :  { %v229_v59 = vrot.slane %v140_v48, %v228_v58 }
  0xcc   :  { %v276_v48 = vsel %vm230_vm4, %v275_v25, %v271_v35 }
  0xcd   :  { %v167_v60 = vpop.xlane.xlu1 %166  ;;  %v231_v52 = vsel %vm230_vm4, %v229_v59, %v224_v46  ;;  %v368_v59 = vld [vmem:[%s997_s3] sm:$0xf]  ;;  %s746_s3 = smov [#allocation7]  }
  0xce   :  { %v143_v61 = vpop.xlane.xlu0 %142  ;;  %v280_v26 = vrot.slane %v167_v60, %v235_v8  ;;  %639 = vmatpush3.msk.msra.mxu1 %vm373_vm10, %v368_v59  ;;  %v1008_v59 = vld [vmem:[#allocation12_spill] sm:$0xff]  ;;  %s592_s6 = sshll.u32 %s746_s3, 4  ;;  %s593_s6 = int_to_ptr.vmem [resolvable:$true] %s592_s6 }
  0xcf   :  { %v236_v29 = vrot.slane %v143_v61, %v235_v8  ;;  %s711_s7 = scalar_lea.vmem %s593_s6, 4096  ;;  %p716_p3 = scmp.lt.s32.totalorder %s593_s6, %s593_s6 }
  0xd0   :  { %v281_v56 = vsel %vm237_vm5, %v280_v26, %v276_v48  ;;  %p712_p2 = scmp.ne.s32.totalorder %s593_s6, %s711_s7  ;;  %p717_p4 = scmp.lt.s32.totalorder %s711_s7, %s711_s7 }
  0xd1   :  { %v170_v45 = vpop.xlane.xlu1 %169  ;;  %v238_v57 = vsel %vm237_vm5, %v236_v29, %v231_v52 }
  0xd2   :  { %v146_v55 = vpop.xlane.xlu0 %145  ;;  %v285_v17 = vrot.slane %v170_v45, %v242_v24  ;;  %v455_v45 = vsub.s32 0, %v922_v42  ;;  %p718_p5 = por %p717_p4, %p716_p3 }
  0xd3   :  { %v243_v34 = vrot.slane %v146_v55, %v242_v24 }
  0xd4   :  { %v286_v55 = vsel %vm244_vm6, %v285_v17, %v281_v56  ;;  %p719_p6 = pnand %p718_p5, %p712_p2 }
  0xd5   :  { %v173_v53 = vpop.xlane.xlu1 %172  ;;  %v245_v61 = vsel %vm244_vm6, %v243_v34, %v238_v57 }
  0xd6   :  { %v149_v54 = vpop.xlane.xlu0 %148  ;;  %v290_v58 = vrot.slane %v173_v53, %v249_v20 }
  0xd7   :  { %v250_v60 = vrot.slane %v149_v54, %v249_v20 }
  0xd8   :  { %v291_v2 = vsel %vm251_vm7, %v290_v58, %v286_v55 }
  0xd9   :  { %v252_v31 = vsel %vm251_vm7, %v250_v60, %v245_v61 }
  0xda   :  { %v293_v3 = vsel %vm292_vm8, %v291_v2, %v252_v31 }
  0xdb   :  { %636 = vmatmul.mubr.msk.f32.vlgmr.msra.gmra.mrb[0].mxu0 %vm294_vm9, %v293_v3 }
 0x1ae   :  { %v363_v25 = vpop.f32.mrb[0].mxu0 }
 0x1af   :  { %v367_v4 = vmax.f32 %v363_v25, 0.0  ;;  %v637_v8 = vpop.f32.mrb[1].mxu0 }
 0x1b0   :  { %v1010_v8 = vld [vmem:[#allocation14_spill] sm:$0xff] }
 0x1b1   :  { %641 = vmatmul.mubr.msk.f32.vlgmr.msra.gmra.mrb[0].mxu1 %vm369_vm11, %v367_v4  ;;  %v1009_v4 = vld [vmem:[#allocation13_spill] sm:$0xff] }
 0x284   :  { %v443_v9 = vpop.f32.mrb[0].mxu1 }
 0x285   :  { %v447_v12 = vsub.f32 0.0, %v443_v9  ;;  %v642_v24 = vpop.f32.mrb[1].mxu1 }
 0x287   :  { %v448_v40 = vmul.f32 1.442695, %v447_v12 }
 0x289   :  { %663 = vpow2.f32 %v448_v40 }
 0x293   :  { %v664_v41 = vpop.eup %663 }
 0x294   :  { %v450_v44 = vadd.f32 1.0, %v664_v41 }
 0x296   :  { %665 = vrcp.f32 %v450_v44 }
 0x2a0   :  { %v666_v20 = vpop.eup %665 }
 0x2a1   :  { %v456_v23 = vrot.slane %v666_v20, %v455_v45  ;;  %v491_v26 = vrot.slane %v666_v20, %v490_v30 }
 0x2a3   :  { %462 = vbcast.lane.b32.xlu1 %v456_v23, 264  ;;  %458 = vbcast.lane.b32.xlu0 %v456_v23, 256 }
 0x2a7   :  { %466 = vbcast.lane.b32.xlu1 %v456_v23, 272  ;;  %474 = vbcast.lane.b32.xlu0 %v456_v23, 288 }
 0x2ab   :  { %470 = vbcast.lane.b32.xlu1 %v456_v23, 280  ;;  %482 = vbcast.lane.b32.xlu0 %v456_v23, 304 }
 0x2af   :  { %478 = vbcast.lane.b32.xlu1 %v456_v23, 296  ;;  %493 = vbcast.lane.b32.xlu0 %v491_v26, 256 }
 0x2b3   :  { %486 = vbcast.lane.b32.xlu1 %v456_v23, 312  ;;  %501 = vbcast.lane.b32.xlu0 %v491_v26, 272 }
 0x2b7   :  { %497 = vbcast.lane.b32.xlu1 %v491_v26, 264  ;;  %509 = vbcast.lane.b32.xlu0 %v491_v26, 288 }
 0x2bb   :  { %505 = vbcast.lane.b32.xlu1 %v491_v26, 280  ;;  %517 = vbcast.lane.b32.xlu0 %v491_v26, 304 }
 0x2bf   :  { %513 = vbcast.lane.b32.xlu1 %v491_v26, 296 }
 0x2c3   :  { %521 = vbcast.lane.b32.xlu1 %v491_v26, 312 }
 0x315   :  { %v463_v29 = vpop.permute.xlu1 %462  ;;  %v459_v49 = vpop.permute.xlu0 %458 }
 0x316   :  { %v525_v14 = vmul.f32 %v463_v29, %v819_v15  ;;  %v526_v17 = vmul.f32 %v463_v29, %v821_v16  ;;  %v523_v42 = vmul.f32 %v459_v49, %v807_v5  ;;  %v524_v34 = vmul.f32 %v459_v49, %v809_v6 }
 0x318   :  { %557 = vst [vmem:[#allocation7 + $0x10] sm:$0xff] %v525_v14  ;;  %558 = vst [vmem:[#allocation7 + $0x18] sm:$0xff] %v526_v17 }
 0x319   :  { %555 = vst [vmem:[#allocation7] sm:$0xff] %v523_v42  ;;  %556 = vst [vmem:[#allocation7 + $0x8] sm:$0xff] %v524_v34  ;;  %v467_v35 = vpop.permute.xlu1 %466  ;;  %v475_v46 = vpop.permute.xlu0 %474 }
 0x31a   :  { %v527_v48 = vmul.f32 %v467_v35, %v831_v27  ;;  %v528_v52 = vmul.f32 %v467_v35, %v833_v28  ;;  %v531_v53 = vmul.f32 %v475_v46, %v854_v50  ;;  %v532_v15 = vmul.f32 %v475_v46, %v856_v51 }
 0x31c   :  { %559 = vst [vmem:[#allocation7 + $0x20] sm:$0xff] %v527_v48  ;;  %560 = vst [vmem:[#allocation7 + $0x28] sm:$0xff] %v528_v52 }
 0x31d   :  { %563 = vst [vmem:[#allocation7 + $0x40] sm:$0xff] %v531_v53  ;;  %564 = vst [vmem:[#allocation7 + $0x48] sm:$0xff] %v532_v15  ;;  %v471_v5 = vpop.permute.xlu1 %470  ;;  %v483_v6 = vpop.permute.xlu0 %482 }
 0x31e   :  { %v529_v16 = vmul.f32 %v471_v5, %v842_v38  ;;  %v530_v54 = vmul.f32 %v471_v5, %v844_v39  ;;  %v535_v56 = vmul.f32 %v483_v6, %v878_v18  ;;  %v536_v27 = vmul.f32 %v483_v6, %v880_v19 }
 0x320   :  { %561 = vst [vmem:[#allocation7 + $0x30] sm:$0xff] %v529_v16  ;;  %562 = vst [vmem:[#allocation7 + $0x38] sm:$0xff] %v530_v54 }
 0x321   :  { %567 = vst [vmem:[#allocation7 + $0x60] sm:$0xff] %v535_v56  ;;  %568 = vst [vmem:[#allocation7 + $0x68] sm:$0xff] %v536_v27  ;;  %v479_v28 = vpop.permute.xlu1 %478  ;;  %v494_v50 = vpop.permute.xlu0 %493 }
 0x322   :  { %v533_v51 = vmul.f32 %v479_v28, %v866_v62  ;;  %v534_v57 = vmul.f32 %v479_v28, %v868_v63  ;;  %v539_v58 = vmul.f32 %v494_v50, %v802_v0  ;;  %v540_v38 = vmul.f32 %v494_v50, %v804_v1 }
 0x324   :  { %565 = vst [vmem:[#allocation7 + $0x50] sm:$0xff] %v533_v51  ;;  %566 = vst [vmem:[#allocation7 + $0x58] sm:$0xff] %v534_v57 }
 0x325   :  { %571 = vst [vmem:[#allocation7 + $0x80] sm:$0xff] %v539_v58  ;;  %572 = vst [vmem:[#allocation7 + $0x88] sm:$0xff] %v540_v38  ;;  %v487_v39 = vpop.permute.xlu1 %486  ;;  %v502_v18 = vpop.permute.xlu0 %501 }
 0x326   :  { %v537_v19 = vmul.f32 %v487_v39, %v890_v36  ;;  %v538_v60 = vmul.f32 %v487_v39, %v892_v37  ;;  %v543_v55 = vmul.f32 %v502_v18, %v825_v21  ;;  %v544_v62 = vmul.f32 %v502_v18, %v827_v22 }
 0x328   :  { %569 = vst [vmem:[#allocation7 + $0x70] sm:$0xff] %v537_v19  ;;  %570 = vst [vmem:[#allocation7 + $0x78] sm:$0xff] %v538_v60 }
 0x329   :  { %575 = vst [vmem:[#allocation7 + $0xa0] sm:$0xff] %v543_v55  ;;  %576 = vst [vmem:[#allocation7 + $0xa8] sm:$0xff] %v544_v62  ;;  %v498_v0 = vpop.permute.xlu1 %497  ;;  %v510_v1 = vpop.permute.xlu0 %509 }
 0x32a   :  { %v541_v63 = vmul.f32 %v498_v0, %v814_v10  ;;  %v542_v61 = vmul.f32 %v498_v0, %v816_v11  ;;  %v547_v2 = vmul.f32 %v510_v1, %v848_v43  ;;  %v548_v36 = vmul.f32 %v510_v1, %v852_v47  ;;  %v1007_v43 = vld [vmem:[#allocation11_spill] sm:$0xff] }
 0x32c   :  { %573 = vst [vmem:[#allocation7 + $0x90] sm:$0xff] %v541_v63  ;;  %574 = vst [vmem:[#allocation7 + $0x98] sm:$0xff] %v542_v61 }
 0x32d   :  { %579 = vst [vmem:[#allocation7 + $0xc0] sm:$0xff] %v547_v2  ;;  %580 = vst [vmem:[#allocation7 + $0xc8] sm:$0xff] %v548_v36  ;;  %v506_v21 = vpop.permute.xlu1 %505  ;;  %v518_v22 = vpop.permute.xlu0 %517 }
 0x32e   :  { %v545_v37 = vmul.f32 %v506_v21, %v837_v32  ;;  %v546_v31 = vmul.f32 %v506_v21, %v839_v33  ;;  %v551_v3 = vmul.f32 %v518_v22, %v872_v7  ;;  %v552_v10 = vmul.f32 %v518_v22, %v876_v13 }
 0x330   :  { %577 = vst [vmem:[#allocation7 + $0xb0] sm:$0xff] %v545_v37  ;;  %578 = vst [vmem:[#allocation7 + $0xb8] sm:$0xff] %v546_v31 }
 0x331   :  { %583 = vst [vmem:[#allocation7 + $0xe0] sm:$0xff] %v551_v3  ;;  %584 = vst [vmem:[#allocation7 + $0xe8] sm:$0xff] %v552_v10  ;;  %v514_v11 = vpop.permute.xlu1 %513 }
 0x332   :  { %v549_v47 = vmul.f32 %v514_v11, %v1007_v43  ;;  %v550_v25 = vmul.f32 %v514_v11, %v1008_v59 }
 0x334   :  { %581 = vst [vmem:[#allocation7 + $0xd0] sm:$0xff] %v549_v47  ;;  %582 = vst [vmem:[#allocation7 + $0xd8] sm:$0xff] %v550_v25 }
 0x335   :  { %v522_v32 = vpop.permute.xlu1 %521 }
 0x336   :  { %v553_v33 = vmul.f32 %v522_v32, %v1009_v4  ;;  %v554_v7 = vmul.f32 %v522_v32, %v1010_v8 }
 0x338   :  { %585 = vst [vmem:[#allocation7 + $0xf0] sm:$0xff] %v553_v33  ;;  %586 = vst [vmem:[#allocation7 + $0xf8] sm:$0xff] %v554_v7 }
 0x339   :  { %722 = shalt.err (!%p719_p6)
}
 0x33a   :  { %s723_s10 = scalar_lea.hbm %s998_s4, 4096 }
 0x33b   :  { %p724_p7 = scmp.ne.s32.totalorder %s998_s4, %s723_s10  ;;  %p727_p8 = scmp.lt.u32.totalorder %s723_s10, %s998_s4 }
 0x33d   :  { %p729_p9 = pnand %p727_p8, %p724_p7 }
 0x33f   :  { %732 = shalt.err (!%p729_p9)
}
 0x340   :  { %598 = dma.vmem_to_hbm [thread:$0]  %s593_s6, 4096, %s998_s4, [#allocation4], %s740_s25, %s740_s25, %s741_s26  }
 0x341   :  { %737 = dma.done.wait [#allocation4], 4096  }
 0x342   :  { %738 = vsyncadd [#allocation4], 4294963200 }
 0x343   :  { %602 = vsyncpa [#allocation3], 1 }
 0x344   :  { %603 = vsyncpa [#allocation6], 1 }
 0x345   :  { %604 = vsyncpa [#allocation4], 1 }

</bundles_post_ra>
